<compile_context>
chip_gen: v6e
topology: v6e:2x2x1
jax: 0.10.0
libtpu: 0.0.40
codegen_flags: <defaults>
</compile_context>

<pallas_src>
import math

import jax
import jax.numpy as jnp
from jax.experimental import pallas as pl
from jax.experimental.pallas import tpu as pltpu


# ---------------------------------------------------------------------------
# Kernels
# ---------------------------------------------------------------------------

def _feature_kernel(h_ref, w_ref, b_ref, o_ref):
    """Lane-packed feature transform:  o = h @ W_blockdiag + b.

    h_ref: (tr, Cin)   batch-packed rows (Cin = B*Fin, possibly lane-padded)
    w_ref: (Cin, Cout) block-diagonal weight (zero outside per-batch blocks)
    b_ref: (1, Cout)   f32 bias row (zeros where no bias should be added)
    o_ref: (tr, Cout)  lane-dense output tile (Cout multiple of 128)
    """
    o_ref[...] = (jnp.dot(h_ref[...], w_ref[...],
                          preferred_element_type=jnp.float32)
                  + b_ref[...]).astype(o_ref.dtype)


def _aggregate_kernel(adj_ref, s_ref, b_ref, o_ref, acc_ref):
    """K-tiled adjacency aggregation:  o = adj @ s + b.

    adj_ref: (tm, tk)   adj tile (row tile i, contraction tile k)
    s_ref:   (tk, C)    lane-packed features for contraction tile k
    b_ref:   (1, C)     f32 bias row
    o_ref:   (tm, C)    lane-dense output tile (constant over k)
    acc_ref: (tm, C)    f32 accumulator scratch
    """
    k = pl.program_id(1)

    @pl.when(k == 0)
    def _():
        acc_ref[...] = jnp.zeros_like(acc_ref)

    acc_ref[...] += jnp.dot(adj_ref[...], s_ref[...],
                            preferred_element_type=jnp.float32)

    @pl.when(k == pl.num_programs(1) - 1)
    def _():
        o_ref[...] = (acc_ref[...] + b_ref[...]).astype(o_ref.dtype)


# ---------------------------------------------------------------------------
# Wrapper helpers
# ---------------------------------------------------------------------------

def _round_up(x, m):
    return ((x + m - 1) // m) * m


def _vmem_cap_bytes():
    """Per-generation VMEM budget: ~75% of physical per-TensorCore VMEM.

    ~48 MiB on v7x (64 MiB physical), ~96 MiB on v5e/v6e (128 MiB physical).
    Leaves headroom for compiler-internal scratch, semaphores and DMA buffers.
    """
    phys = 128 << 20
    try:
        info = pltpu.get_tpu_info()
        phys = int(getattr(info, "vmem_capacity_bytes", phys))
    except Exception:
        pass
    phys = max(32 << 20, min(phys, 256 << 20))
    return (phys * 3) // 4


def _pick_tiles(n, itemsize, cols, vmem_cap):
    """Row / contraction tiles for the (N, N) adjacency."""
    # Contraction (lane) tile: multiple of 128 dividing N, else the full dim.
    tk = n
    for c in (512, 256, 128):
        if n >= c and n % c == 0:
            tk = c
            break
    # Row (sublane) tile: multiple of 8 dividing N, chosen < N so the "parallel"
    # axis has >= 2 tiles (both v7x TensorCores get work); largest that fits the
    # generation-specific VMEM budget (double-buffered blocks + f32 accumulator).
    tm = n
    for c in (1024, 512, 256, 128, 64, 32, 16, 8):
        if c < n and n % c == 0:
            need = ((2 * c * tk + 2 * tk * cols + 2 * c * cols) * itemsize
                    + c * cols * 4 + (2 << 20))
            if need <= vmem_cap:
                tm = c
                break
    return tm, tk


def _block_diag_weight(w, batch, rows, cols, dtype):
    """Block-diagonal packing of W so a single dot handles the whole batch.

    wb[b*Fin + i, b*Fout + f] = W[i, f]; zero elsewhere (incl. lane padding).
    For the small B typical here this costs at most one extra 128-row MXU pass.
    """
    fin, fout = w.shape
    wb = jnp.zeros((rows, cols), dtype)
    wc = w.astype(dtype)
    for b in range(batch):
        wb = wb.at[b * fin:(b + 1) * fin, b * fout:(b + 1) * fout].set(wc)
    return wb


def _pad_cols(a, cols):
    pad = cols - a.shape[1]
    return a if pad == 0 else jnp.pad(a, ((0, 0), (0, pad)))


def _feature_transform(h_packed, w_block, bias_row, out_dtype, tr, vmem_cap):
    n, cin = h_packed.shape
    cout = w_block.shape[1]
    itemsize = jnp.dtype(h_packed.dtype).itemsize
    vmem = int(min(vmem_cap, max(
        2 * tr * cin * itemsize + cin * cout * itemsize + cout * 4
        + 2 * tr * cout * jnp.dtype(out_dtype).itemsize + (2 << 20),
        16 << 20)))
    return pl.pallas_call(
        _feature_kernel,
        out_shape=jax.ShapeDtypeStruct((n, cout), out_dtype),
        grid_spec=pltpu.PrefetchScalarGridSpec(
            num_scalar_prefetch=0,
            grid=(n // tr,),
            in_specs=[
                pl.BlockSpec((tr, cin), lambda i: (i, 0)),    # packed rows (streamed)
                pl.BlockSpec((cin, cout), lambda i: (0, 0)),  # block-diag W (tiny, shared)
                pl.BlockSpec((1, cout), lambda i: (0, 0)),    # bias row (tiny, shared)
            ],
            out_specs=pl.BlockSpec((tr, cout), lambda i: (i, 0)),
        ),
        compiler_params=pltpu.CompilerParams(
            dimension_semantics=("parallel",),
            vmem_limit_bytes=vmem,
        ),
    )(h_packed, w_block, bias_row)


def _adj_aggregate(adj_c, s_packed, bias_row, out_dtype, tm, tk, vmem_cap):
    n = adj_c.shape[0]
    cols = s_packed.shape[1]
    itemsize = jnp.dtype(adj_c.dtype).itemsize
    vmem = int(min(vmem_cap, max(
        2 * tm * tk * itemsize + 2 * tk * cols * itemsize + tm * cols * 4
        + 2 * tm * cols * jnp.dtype(out_dtype).itemsize + cols * 4 + (2 << 20),
        16 << 20)))
    return pl.pallas_call(
        _aggregate_kernel,
        out_shape=jax.ShapeDtypeStruct((n, cols), out_dtype),
        grid_spec=pltpu.PrefetchScalarGridSpec(
            num_scalar_prefetch=0,
            grid=(n // tm, n // tk),          # reduction axis last, "arbitrary"
            in_specs=[
                pl.BlockSpec((tm, tk), lambda i, k: (i, k)),    # adj tile (streamed)
                pl.BlockSpec((tk, cols), lambda i, k: (k, 0)),  # packed features (streamed)
                pl.BlockSpec((1, cols), lambda i, k: (0, 0)),   # bias row (tiny, shared)
            ],
            out_specs=pl.BlockSpec((tm, cols), lambda i, k: (i, 0)),
            scratch_shapes=[pltpu.VMEM((tm, cols), jnp.float32)],
        ),
        compiler_params=pltpu.CompilerParams(
            dimension_semantics=("parallel", "arbitrary"),
            vmem_limit_bytes=vmem,
        ),
    )(adj_c, s_packed, bias_row)


# ---------------------------------------------------------------------------
# Public forward
# ---------------------------------------------------------------------------

def graph_convolution(adj, x, weight, bias, *, compute_dtype=None):
    """adj: (N, N), x: (B, N, Fin), weight: (Fin, Fout), bias: (Fout,).

    Returns (B, N, Fout) in x.dtype.  `compute_dtype` (e.g. jnp.bfloat16) sets the
    MXU input dtype; accumulation is always float32.
    """
    B, N, Fin = x.shape
    Fout = weight.shape[1]
    out_dtype = x.dtype
    cd = jnp.dtype(compute_dtype) if compute_dtype is not None else jnp.dtype(x.dtype)

    cin = B * Fin
    cout = B * Fout
    cin_pad = _round_up(cin, 128)
    cout_pad = _round_up(cout, 128)

    vmem_cap = _vmem_cap_bytes()

    adj_c = adj.astype(cd)
    # Batch-packed node-major layout: x_packed[n, b*Fin + i] = x[b, n, i].
    x_packed = jnp.transpose(x, (1, 0, 2)).reshape(N, cin).astype(cd)
    # Bias tiled across the batch slabs and lane-padded with zeros; added ONCE per
    # output tile inside the kernel.
    bias_row = jnp.pad(jnp.tile(bias.astype(jnp.float32), B),
                       (0, cout_pad - cout)).reshape(1, cout_pad)

    xw_first = Fout <= Fin   # cheaper-FLOP ordering picked per shape

    if xw_first:
        # Stage 1 (once, hoisted): support_packed = x_packed @ W_blockdiag
        #   -> (N, cout_pad), lane-dense.
        # Stage 2: out = adj @ support_packed + bias, K-tiled with f32 accumulator.
        w_block = _block_diag_weight(weight, B, cin, cout_pad, cd)
        tm, tk = _pick_tiles(N, cd.itemsize, cout_pad, vmem_cap)
        zero_bias = jnp.zeros((1, cout_pad), jnp.float32)
        support = _feature_transform(x_packed, w_block, zero_bias, cd, tm, vmem_cap)
        out_packed = _adj_aggregate(adj_c, support, bias_row, out_dtype,
                                    tm, tk, vmem_cap)
    else:
        # Aggregate the (smaller) Fin features first, then transform: (adj @ x) @ W.
        x_padded = _pad_cols(x_packed, cin_pad)
        tm, tk = _pick_tiles(N, cd.itemsize, max(cin_pad, cout_pad), vmem_cap)
        zero_bias = jnp.zeros((1, cin_pad), jnp.float32)
        h = _adj_aggregate(adj_c, x_padded, zero_bias, cd, tm, tk, vmem_cap)
        w_block = _block_diag_weight(weight, B, cin_pad, cout_pad, cd)
        out_packed = _feature_transform(h, w_block, bias_row, out_dtype, tm, vmem_cap)

    # (N, cout_pad) -> strip lane padding -> (B, N, Fout).
    out = out_packed[:, :cout].reshape(N, B, Fout)
    return jnp.transpose(out, (1, 0, 2))


# ---------------------------------------------------------------------------
# Parameter init (deterministic re-implementation of the PyTorch init)
# ---------------------------------------------------------------------------

def _init_params(key, in_features, out_features):
    # kaiming_uniform_(weight, a=sqrt(5)) -> U(-1/sqrt(fan_in), 1/sqrt(fan_in))
    # bias ~ U(-1/sqrt(fan_in), 1/sqrt(fan_in))
    kw, kb = jax.random.split(key)
    bound = 1.0 / math.sqrt(in_features)
    weight = jax.random.uniform(kw, (in_features, out_features),
                                jnp.float32, -bound, bound)
    bias = jax.random.uniform(kb, (out_features,), jnp.float32, -bound, bound)
    return weight, bias


if __name__ == "__main__":
    key = jax.random.PRNGKey(0)
    k_x, k_a, k_p, k_p2 = jax.random.split(key, 4)

    B, N, Fin, Fout = 2, 16, 32, 8   # out_features = hp.future_seq -> pick 8

    # The module's global uses num_nodes=1 / adj=eye; use a small general N and a
    # row-normalized random adjacency so the adj matmul is actually exercised.
    x = jax.random.normal(k_x, (B, N, Fin), jnp.float32)
    a = jax.random.uniform(k_a, (N, N), jnp.float32)
    adj = a / jnp.sum(a, axis=1, keepdims=True)
    weight, bias = _init_params(k_p, Fin, Fout)

    ref = jnp.matmul(adj, jnp.matmul(x, weight)) + bias

    # f32 compute path (order A: x @ W first, since Fout <= Fin).
    out = graph_convolution(adj, x, weight, bias)
    jax.block_until_ready(out)
    assert out.shape == (B, N, Fout)
    assert jnp.allclose(out, ref, atol=1e-3, rtol=1e-3)

    # bf16 compute path (v5e/v6e/v7x MXU + halved adj HBM traffic), f32 accumulation.
    out_bf = graph_convolution(adj, x, weight, bias, compute_dtype=jnp.bfloat16)
    jax.block_until_ready(out_bf)
    assert jnp.allclose(out_bf, ref, atol=5e-2, rtol=5e-2)

    # Reversed matmul order path (Fout > Fin): (adj @ x) @ W.
    Fin2, Fout2 = 8, 32
    x2 = jax.random.normal(k_x, (B, N, Fin2), jnp.float32)
    weight2, bias2 = _init_params(k_p2, Fin2, Fout2)
    ref2 = jnp.matmul(adj, jnp.matmul(x2, weight2)) + bias2
    out2 = graph_convolution(adj, x2, weight2, bias2)
    jax.block_until_ready(out2)
    assert out2.shape == (B, N, Fout2)
    assert jnp.allclose(out2, ref2, atol=1e-3, rtol=1e-3)

    print("KERNEL_OK")
</pallas_src>

<mosaic_0001>
module attributes {stable_mosaic.version = 11 : i64} {
  func.func @_feature_kernel(%arg0: i32, %arg1: memref<8x64xf32, #tpu.memory_space<vmem>>, %arg2: memref<64x128xf32, #tpu.memory_space<vmem>>, %arg3: memref<1x128xf32, #tpu.memory_space<vmem>>, %arg4: memref<8x128xf32, #tpu.memory_space<vmem>>) attributes {dimension_semantics = [#tpu.dimension_semantics<parallel>], iteration_bounds = array<i64: 2>, scalar_prefetch = 0 : i64, scratch_operands = 0 : i64, tpu.core_type = #tpu.core_type<tc>, window_params = [{transform_indices = @transform_0, window_bounds = array<i64: 8, 64>}, {pipeline_mode = #tpu.pipeline_mode<synchronous>, transform_indices = @transform_1, window_bounds = array<i64: 64, 128>}, {pipeline_mode = #tpu.pipeline_mode<synchronous>, transform_indices = @transform_2, window_bounds = array<i64: 1, 128>}, {transform_indices = @transform_3, window_bounds = array<i64: 8, 128>}]} {
    %c0 = arith.constant 0 : index
    %c0_0 = arith.constant 0 : index
    %0 = vector.load %arg1[%c0, %c0_0] : memref<8x64xf32, #tpu.memory_space<vmem>>, vector<8x64xf32>
    %c0_1 = arith.constant 0 : index
    %c0_2 = arith.constant 0 : index
    %1 = vector.load %arg2[%c0_1, %c0_2] : memref<64x128xf32, #tpu.memory_space<vmem>>, vector<64x128xf32>
    %cst = arith.constant dense<0.000000e+00> : vector<8x128xf32>
    %2 = tpu.matmul %0, %1, %cst {dimension_numbers = #tpu.dot_dimension_numbers<[1], [0], [0], [1], [0, 0, 1, 1], [], []>} : vector<8x64xf32>, vector<64x128xf32>, vector<8x128xf32> -> vector<8x128xf32>
    %c0_3 = arith.constant 0 : index
    %c0_4 = arith.constant 0 : index
    %3 = vector.load %arg3[%c0_3, %c0_4] : memref<1x128xf32, #tpu.memory_space<vmem>>, vector<1x128xf32>
    %4 = vector.broadcast %3 : vector<1x128xf32> to vector<8x128xf32>
    %5 = arith.addf %2, %4 : vector<8x128xf32>
    %c0_5 = arith.constant 0 : index
    %c0_6 = arith.constant 0 : index
    %6 = vector.load %arg4[%c0_5, %c0_6] : memref<8x128xf32, #tpu.memory_space<vmem>>, vector<8x128xf32>
    tpu.vector_store %arg4[%c0_5, %c0_6], %5 {strides = array<i32>} : memref<8x128xf32, #tpu.memory_space<vmem>>, vector<8x128xf32>,
    return
  }
  func.func @transform_0(%arg0: i32) -> (i32, i32) {
    %c0_i32 = arith.constant 0 : i32
    %c0_i32_0 = arith.constant 0 : i32
    return %arg0, %c0_i32 : i32, i32
  }
  func.func @transform_1(%arg0: i32) -> (i32, i32) {
    %c0_i32 = arith.constant 0 : i32
    %c0_i32_0 = arith.constant 0 : i32
    %c0_i32_1 = arith.constant 0 : i32
    return %c0_i32, %c0_i32_0 : i32, i32
  }
  func.func @transform_2(%arg0: i32) -> (i32, i32) {
    %c0_i32 = arith.constant 0 : i32
    %c0_i32_0 = arith.constant 0 : i32
    %c0_i32_1 = arith.constant 0 : i32
    return %c0_i32, %c0_i32_0 : i32, i32
  }
  func.func @transform_3(%arg0: i32) -> (i32, i32) {
    %c0_i32 = arith.constant 0 : i32
    %c0_i32_0 = arith.constant 0 : i32
    return %arg0, %c0_i32 : i32, i32
  }
}

</mosaic_0001>

<bundles_post_ra>
// kernel: tpu_custom_call.1
= control target key start
LH: loop header
LB: loop body
LE: loop exit
PB: predicated region body
PF: predicated region fallthrough
CT: control target
= control target key end

     0   :  { %8 = vsyncpa [#allocation3], 0  ;;  %s809_s0 = inlined_call_operand.hbm [shape: f32[16,64], index: 0, kind: input, shape index: {}]   ;;  %s810_s1 = inlined_call_operand.hbm [shape: f32[64,128], index: 1, kind: input, shape index: {}]   ;;  %s811_s2 = inlined_call_operand.vmem [shape: f32[1,128], index: 2, kind: input, shape index: {}]   ;;  %s812_s3 = inlined_call_operand.hbm [shape: f32[16,128], index: 3, kind: output, shape index: {}]  }
   0x1   :  { %10 = vsyncpa [#allocation3 + $0x1], 0 }
   0x2   :  { %11 = vsyncpa [#allocation6], 0 }
   0x3   :  { %12 = vsyncpa [#allocation4], 0 }
   0x4   :  { %14 = vsyncpa [#allocation4 + $0x1], 0  ;;  %s642_s12 = smov 0   ;;  %s644_s13 = smov 0  }
   0x5   :  { %s646_s14 = smov 0   ;;  %s648_s15 = smov 0  }
   0x6 LB: > { %s663_s16 = sadd.s32 4294967295, %s613_s15   ;;  %s386_s17 = sadd.s32 4294967294, %s613_s15   ;;  %s613_s15 = sphi %s648_s15, %s834_s15   ;;  %s609_s14 = sphi %s646_s14, %s833_s14   ;;  %s605_s13 = sphi %s644_s13, %s832_s13   ;;  %s601_s12 = sphi %s642_s12, %s831_s12  }
   0x7   : > { %p40_p0 = scmp.ne.s32.totalorder %s605_s13, %s601_s12  ;;  %p813_p1 = scmp.eq.s32.totalorder %s663_s16, 0 }
   0x8   : > { %p112_p3 = scmp.eq.s32.totalorder %s386_s17, 1  ;;  %p387_p5 = scmp.ge.s32.totalorder %s613_s15, 1 }
   0x9   : > { %p672_p4 = por %p813_p1, %p40_p0  ;;  %p119_p7 = scmp.lt.s32.totalorder %s613_s15, 3 }
   0xa   : > { %p677_p6 = por %p112_p3, %p40_p0  ;;  %s615_s21 = smov [#allocation5]  }
   0xb   : > { %s817_s18 = scalar_select %p672_p4, 1, 0 }
   0xc   : > { %s818_s19 = scalar_select %p677_p6, 1, 0 }
   0xd   : > { %p682_p8 = pnand %p387_p5, %p119_p7  ;;  %s131_s22 = sshll.u32 %s615_s21, 4  ;;  %s132_s22 = int_to_ptr.vmem [resolvable:$true] %s131_s22 }
   0xe   : > { %s696_s24 = sadd.s32 1, %s613_s15   ;;  %s27_s25 = sadd.s32 1, %s609_s14 }
   0xf   : > { %s819_s20 = scalar_select %p682_p8, 1, 0 }
  0x10   : > { %p438_p9 = pneg %p682_p8  ;;  %s24_s26 = ssub.s32 %s613_s15, %s696_s24 }
  0x11   : > { %s502_s27 = scalar_lea.vmem %s132_s22, 1024  ;;  %p510_p5 = scmp.lt.s32.totalorder %s132_s22, %s132_s22 }
  0x12   : > { %p691_p11 = pnand %p438_p9, %p813_p1  ;;  %p503_p13 = scmp.ne.s32.totalorder %s132_s22, %s502_s27 }
  0x13   : > { %p511_p7 = scmp.lt.s32.totalorder %s502_s27, %s502_s27 }
  0x14   : > { %p493_p12 = pneg %p691_p11 }
  0x15   : > { %p512_p10 = por %p511_p7, %p510_p5 }
  0x16   : > { %p505_p0 = pnand %p503_p13, %p493_p12 }
  0x18   : > { %p506_p3 = pneg %p505_p0 }
  0x1a   : > { %p513_p2 = pnand %p512_p10, %p506_p3 }
  0x1c   : > { %516 = shalt.err (!%p513_p2)
}
  0x1d   : > { %s616_s28 = smov 128   ;;  %s617_s29 = smov 8  }
  0x1e   : > { %441 = dma.hbm_to_vmem [thread:$0]  (!%p691_p11), %s810_s1, 1024, %s132_s22, [#allocation6], %s616_s28, %s616_s28, %s617_s29  }
  0x1f   : > { %p25_p9 = scmp.eq.s32.totalorder %s24_s26, 0  ;;  %p34_p12 = scmp.ne.s32.totalorder %s609_s14, %s605_s13 }
  0x20   : > { %p35_p10 = scmp.eq.s32.totalorder %s613_s15, 0  ;;  %p451_p2 = scmp.lt.s32.totalorder %s613_s15, 2 }
  0x21   : > { %s713_s5 = scalar_select %p25_p9, %s609_s14, %s27_s25  }
  0x22   : > { %p36_p13 = por %p35_p10, %p34_p12  ;;  %p821_p0 = scmp.eq.s32.totalorder %s663_s16, 1 }
  0x23   : > { %s148_s7 = sand.u32 1, %s609_s14   ;;  %s391_s8 = sshll.u32 %s613_s15, 7 }
  0x24   : > { %p717_p3 = por %p821_p0, %p34_p12  ;;  %s390_s9 = sshll.u32 %s148_s7, 3 }
  0x25   : > { %s726_s17 = scalar_lea.hbm %s809_s0, %s391_s8  ;;  %s152_s21 = scalar_lea.vmem [#allocation2], %s390_s9 }
  0x26   : > { %s822_s6 = scalar_select %p717_p3, 1, 0 }
  0x27   : > { %s159_s22 = sshll.u32 %s152_s21, 4  ;;  %p728_p11 = pnand %p451_p2, %p36_p13  ;;  %s160_s22 = int_to_ptr.vmem [resolvable:$true] %s159_s22 }
  0x28   : > { %s149_s25 = scalar_lea.sflag [#allocation3], %s148_s7  ;;  %s517_s26 = scalar_lea.hbm %s726_s17, 128 }
  0x29   : > { %p518_p5 = scmp.ne.s32.totalorder %s726_s17, %s517_s26  ;;  %p519_p7 = pneg %p728_p11 }
  0x2a   : > { %s522_s29 = scalar_lea.hbm %s809_s0, 256  ;;  %p523_p10 = scmp.lt.s32.totalorder %s726_s17, %s809_s0 }
  0x2b   : > { %p520_p9 = pnand %p519_p7, %p518_p5  ;;  %p524_p2 = scmp.lt.s32.totalorder %s522_s29, %s517_s26 }
  0x2d   : > { %p521_p12 = pneg %p520_p9  ;;  %p525_p13 = por %p524_p2, %p523_p10 }
  0x2f   : > { %p526_p0 = pnand %p525_p13, %p521_p12 }
  0x31   : > { %529 = shalt.err (!%p526_p0)
}
  0x32   : > { %s530_s8 = scalar_lea.vmem %s160_s22, 128  ;;  %s618_s7 = smov [#allocation2]  }
  0x33   : > { %p531_p1 = scmp.ne.s32.totalorder %s160_s22, %s530_s8  ;;  %s535_s9 = sshll.u32 %s618_s7, 4  ;;  %s536_s9 = int_to_ptr.vmem [resolvable:$false] %s535_s9 }
  0x34   : > { %s537_s10 = scalar_lea.vmem %s536_s9, 256  ;;  %p538_p5 = scmp.lt.s32.totalorder %s160_s22, %s536_s9 }
  0x35   : > { %p533_p6 = pnand %p531_p1, %p519_p7  ;;  %p539_p9 = scmp.lt.s32.totalorder %s537_s10, %s530_s8 }
  0x37   : > { %p534_p3 = pneg %p533_p6  ;;  %p540_p4 = por %p539_p9, %p538_p5 }
  0x39   : > { %p541_p8 = pnand %p540_p4, %p534_p3 }
  0x3b   : > { %544 = shalt.err (!%p541_p8)
}
  0x3c   : > { %445 = dma.hbm_to_vmem [thread:$0]  (!%p728_p11), %s726_s17, 128, %s160_s22, %s149_s25  }
  0x3d   : > { %p824_p12 = scmp.ne.s32.totalorder %s819_s20, 0 }
  0x3e   : > { %s749_s11 = sand.u32 (!%p824_p12), 1, %s605_s13   ;;  %p825_p1 = scmp.ne.s32.totalorder (!%p824_p12), %s817_s18, 0 }
  0x3f   : > { %168 = sbr.rel (%p824_p12) target bundleno = 297 (0x129), region = 32  ;;  %s393_s21 = sshll.u32 (!%p824_p12), %s749_s11, 3 }
  0x40   : > { %s171_s26 = scalar_lea.sflag (!%p824_p12), [#allocation3], %s749_s11  ;;  %s174_s27 = scalar_lea.vmem (!%p824_p12), [#allocation2], %s393_s21 }
  0x44   : > { %588 = dma.done.wait (%p825_p1), %s171_s26, 128  }
  0x45   : > { %590 = vsyncadd (%p825_p1), %s171_s26, 4294967168  ;;  %p826_p4 = scmp.eq.s32.totalorder %s663_s16, 0 }
  0x47   : > { %592 = dma.done.wait (%p826_p4), [#allocation6], 1024   ;;  %p827_p6 = pmov %p826_p4 }
  0x48   : > { %v619_v0 = vmov 0.0   ;;  %vm620_vm0 = vmmov 0   ;;  %v209_v1 = vld [vmem:[#allocation5 + $0x38] sm:$0xff]  ;;  %v208_v2 = vld [vmem:[#allocation5 + $0x30] sm:$0xff]  ;;  %v207_v3 = vld [vmem:[#allocation5 + $0x28] sm:$0xff]  ;;  %vm217_vm1 = vcmask 523264  }
  0x49   : > { %594 = vsyncadd (%p827_p6), [#allocation6], 4294966272  ;;  %411 = vmatprep.subr.mxu0 %v619_v0  ;;  %427 = vmatprep.mubr.msk.f32.mxu0 %vm620_vm0, %v619_v0  ;;  %v206_v4 = vld [vmem:[#allocation5 + $0x20] sm:$0xff]  ;;  %v205_v5 = vld [vmem:[#allocation5 + $0x18] sm:$0xff]  ;;  %s399_s17 = sshll.u32 %s663_s16, 7  ;;  %s200_s22 = scalar_lea.vmem [#allocation7], %s393_s21 }
  0x4a   : > { %412 = vmatpush3.msra.mxu0 %v209_v1  ;;  %v204_v6 = vld [vmem:[#allocation5 + $0x10] sm:$0xff]  ;;  %v203_v7 = vld [vmem:[#allocation5 + $0x8] sm:$0xff]  ;;  %v202_v8 = vld [vmem:[#allocation5] sm:$0xff]  ;;  %s306_s23 = sshll.u32 %s200_s22, 4  ;;  %s772_s29 = scalar_lea.hbm %s812_s3, %s399_s17  ;;  %s307_s23 = int_to_ptr.vmem [resolvable:$true] %s306_s23 }
  0x4b   : > { %413 = vmatprep.subr.mxu0 %v619_v0  ;;  %v201_v9 = vld [vmem:[%s174_s27] sm:$0xff]  ;;  %s293_s30 = scalar_lea.sflag [#allocation4], %s749_s11  ;;  %s545_s4 = scalar_lea.vmem %s307_s23, 128 }
  0x4c   : > { %414 = vmatpush3.msra.mxu0 %v208_v2  ;;  %v396_v10 = vld [vmem:[%s811_s2] ss:$0 sm:$0xff]  ;;  %p546_p8 = scmp.ne.s32.totalorder %s307_s23, %s545_s4  ;;  %p828_p3 = scmp.ne.s32.totalorder %s822_s6, 0 }
  0x4d   : > { %415 = vmatprep.subr.mxu0 %v619_v0  ;;  %s621_s16 = smov [#allocation7]  }
  0x4e   : > { %416 = vmatpush3.msra.mxu0 %v207_v3  ;;  %p547_p11 = pnand %p546_p8, %p828_p3  ;;  %s549_s8 = sshll.u32 %s621_s16, 4  ;;  %s550_s8 = int_to_ptr.vmem [resolvable:$false] %s549_s8 }
  0x4f   : > { %417 = vmatprep.subr.mxu0 %v619_v0  ;;  %s551_s7 = scalar_lea.vmem %s550_s8, 256  ;;  %p552_p10 = scmp.lt.s32.totalorder %s307_s23, %s550_s8 }
  0x50   : > { %418 = vmatpush3.msra.mxu0 %v206_v4  ;;  %p548_p7 = pneg %p547_p11  ;;  %p553_p2 = scmp.lt.s32.totalorder %s551_s7, %s545_s4 }
  0x51   : > { %419 = vmatprep.subr.mxu0 %v619_v0 }
  0x52   : > { %420 = vmatpush3.msra.mxu0 %v205_v5  ;;  %p554_p13 = por %p553_p2, %p552_p10 }
  0x53   : > { %421 = vmatprep.subr.mxu0 %v619_v0 }
  0x54   : > { %422 = vmatpush3.msra.mxu0 %v204_v6  ;;  %p555_p0 = pnand %p554_p13, %p548_p7 }
  0x55   : > { %423 = vmatprep.subr.mxu0 %v619_v0 }
  0x56   : > { %424 = vmatpush3.msra.mxu0 %v203_v7 }
  0x57   : > { %425 = vmatprep.subr.mxu0 %v619_v0 }
  0x58   : > { %426 = vmatpush3.msra.mxu0 %v202_v8 }
  0x59   : > { %428 = vmatmul.mubr.msk.f32.vlgmr.msra.gmra.mxu0 %vm217_vm1, %v201_v9 }
 0x119   : > { %v287_v11 = vpop.f32.mrf.mxu0 }
 0x11a   : > { %v288_v12 = vadd.f32 %v396_v10, %v287_v11 }
 0x11b   : > { %v429_v13 = vpop.f32.mrf.mxu0 }
 0x11c   : > { %291 = vst [vmem:[%s200_s22] sm:$0xff] %v288_v12 }
 0x11d   : > { %558 = shalt.err (!%p555_p0)
}
 0x11e   : > { %s559_s9 = scalar_lea.hbm %s772_s29, 128  ;;  %s563_s21 = scalar_lea.hbm %s812_s3, 256 }
 0x11f   : > { %p560_p5 = scmp.ne.s32.totalorder %s772_s29, %s559_s9  ;;  %p564_p1 = scmp.lt.s32.totalorder %s772_s29, %s812_s3 }
 0x120   : > { %p565_p4 = scmp.lt.s32.totalorder %s563_s21, %s559_s9 }
 0x121   : > { %p561_p9 = pnand %p560_p5, %p828_p3 }
 0x122   : > { %p566_p6 = por %p565_p4, %p564_p1 }
 0x123   : > { %p562_p12 = pneg %p561_p9 }
 0x125   : > { %p567_p8 = pnand %p566_p6, %p562_p12 }
 0x127   : > { %570 = shalt.err (!%p567_p8)
}
 0x128   : > { %436 = dma.vmem_to_hbm [thread:$0]  (%p828_p3), %s307_s23, 128, %s772_s29, %s293_s30  }
 0x129 PF: > { %s318_s18 = sand.u32 1, %s601_s12   ;;  %p829_p11 = scmp.ne.s32.totalorder %s818_s19, 0 }
 0x12a   : > { %p830_p7 = scmp.ge.s32.totalorder %s613_s15, 2  ;;  %s319_s20 = scalar_lea.sflag [#allocation4], %s318_s18 }
 0x12c   : > { %p447_p10 = pnand %p830_p7, %p829_p11 }
 0x12e   : > { %p448_p2 = pneg %p447_p10 }
 0x130   : > { %596 = dma.done.wait (%p448_p2), %s319_s20, 128  }
 0x131   : > { %598 = vsyncadd (%p448_p2), %s319_s20, 4294967168  ;;  %p17_p13 = scmp.ge.s32.totalorder %s696_s24, 4   ;;  %s831_s12 = smov %s605_s13 }
 0x132   : > { %s832_s13 = smov %s609_s14  ;;  %s833_s14 = smov %s713_s5 }
 0x133   : > { %s834_s15 = smov %s696_s24  ;;  %19 = sbr.rel (!%p17_p13) target bundleno = 6 (0x6), region = 81 }
 0x138   :  { %324 = vsyncpa [#allocation3], 1 }
 0x139   :  { %326 = vsyncpa [#allocation3 + $0x1], 1 }
 0x13a   :  { %327 = vsyncpa [#allocation6], 1 }
 0x13b   :  { %328 = vsyncpa [#allocation4], 1 }
 0x13c   :  { %330 = vsyncpa [#allocation4 + $0x1], 1 }

</bundles_post_ra>
